<compile_context>
chip_gen: v5e
topology: v5e:2x2
jax: 0.10.0
libtpu: 0.0.40
codegen_flags: <defaults>
</compile_context>

<pallas_src>
import functools

import jax
import jax.numpy as jnp
import numpy as np
from jax.experimental import pallas as pl
from jax.experimental.pallas import tpu as pltpu


def _log_softmax(x, axis=-1):
    m = jnp.max(x, axis=axis, keepdims=True)
    s = x - m
    return s - jnp.log(jnp.sum(jnp.exp(s), axis=axis, keepdims=True))


def _round_up(n, m):
    return ((n + m - 1) // m) * m


def _cdiv(a, b):
    return -(-a // b)


def _side_info_kernel(x_ref, wc_ref, bc_ref, sel_ref, wh_ref, bh_ref,
                      ewsct_ref, mw_ref, cmask_ref, zoh_ref, wz_ref, out_ref,
                      *, ncp):
    """BB batch elements per grid step.

    x_ref    : (BB*NACC, 9C)   im2col patches for this batch chunk (rows zero-padded)
    wc_ref   : (9C, F)         conv weight, rows ordered (kh, kw, c)
    bc_ref   : (1, F)          conv bias
    sel_ref  : (BB, BB*NACC)   block-diagonal 1/(H*W) mean-pool selector
    wh_ref   : (F, NCP+NSP)    fused head: [base W^T (class-padded) | fc_side W^T feat part (side-padded)]
    bh_ref   : (1, NCP+NSP)    fused head bias
    ewsct_ref: (NSP, NCP)      exp(wsc^T - mw); padded side rows are exactly 0
    mw_ref   : (1, NCP)        column max of wsc^T (hoisted)
    cmask_ref: (1, NCP)        additive class-padding mask (0 valid / -1e30 pad)
    zoh_ref  : (1, BB, NSP)    one-hot(z) per sample (side-padded with zeros)
    wz_ref   : (1, BB, NCP)    wsc[:, z]^T per sample (class-padded with zeros)
    out_ref  : (1, BB, NCP)    log Q(Y | x, z), classes padded to NCP lanes
    """
    # ---- 3x3 'same' conv as ONE im2col matmul, + bias, ReLU. ----
    conv = jnp.maximum(
        jnp.dot(x_ref[...], wc_ref[...], preferred_element_type=jnp.float32)
        + bc_ref[...], 0.0)                                             # (BB*NACC, F)

    # ---- global average pool for all BB samples: block-diagonal selection matmul. ----
    feat = jnp.dot(sel_ref[...], conv, preferred_element_type=jnp.float32)   # (BB, F)

    # ---- fused heads: base classifier logits | fc_side(feat), both whole lane tiles. ----
    head = jnp.dot(feat, wh_ref[...], preferred_element_type=jnp.float32) + bh_ref[...]
    base = _log_softmax(head[:, :ncp] + cmask_ref[...], axis=-1)        # log Q(y|x), (BB, NCP)
    side = head[:, ncp:]                                                # (BB, NSP)

    # ---- per-class logsumexp over n_side as an exp-space matmul (no (B, nc, ns) tensor):
    #      lse[b, c] = log sum_s exp(side[b, s] + wsc^T[s, c]). ----
    ms = jnp.max(side, axis=-1, keepdims=True)                          # (BB, 1)
    lse = jnp.log(jnp.dot(jnp.exp(side - ms), ewsct_ref[...],
                          preferred_element_type=jnp.float32)) + ms + mw_ref[...]

    # ---- gather observed z BEFORE the class softmax (one-hot dot; z math hoisted). ----
    side_at_z = jnp.sum(side * zoh_ref[0], axis=-1, keepdims=True)      # (BB, 1)

    # log Q(y|x) + log Q(z|x,y), then class softmax on a lane-dense 2D array.
    combined = base + side_at_z + wz_ref[0] - lse                       # (BB, NCP)
    out_ref[0] = _log_softmax(combined, axis=-1)


def side_information_forward(x, z, params):
    """Equivalent of SideInformationModel.forward(x, z) -> (B, n_classes) logits."""
    w_conv, b_conv, wb, bb, wsf, wsc, bs = params
    B, C, H, W = x.shape
    n_feat = w_conv.shape[0]
    n_classes = wb.shape[1]
    n_side = wsf.shape[1]

    hw = H * W
    nacc = _round_up(hw, 8)                       # pooled rows per sample (sublane aligned)
    k9 = 9 * C                                    # im2col contraction width
    ncp = _round_up(max(n_classes, 128), 128)     # lane-dense class dim
    nsp = _round_up(max(n_side, 128), 128)        # lane-dense side dim (whole-tile head slices)

    # ---- batching: BB samples per grid step; keep >= 2 steps when possible (v7x 2 TCs). ----
    n_steps = max(2, _cdiv(B, 8)) if B >= 2 else 1
    BB = _cdiv(B, n_steps)
    Bp = n_steps * BB

    # ---- wrapper-side im2col: NCHW -> padded NHWC -> (Bp*NACC, 9C), zero slack. ----
    xh = jnp.transpose(x, (0, 2, 3, 1)).astype(jnp.float32)
    xp = jnp.pad(xh, ((0, 0), (1, 1), (1, 1), (0, 0)))
    cols = [xp[:, kh:kh + H, kw:kw + W, :] for kh in range(3) for kw in range(3)]
    xcol = jnp.stack(cols, axis=3).reshape(B, hw, k9)
    xcol = jnp.pad(xcol, ((0, Bp - B), (0, nacc - hw), (0, 0)))
    xcol = xcol.reshape(Bp * nacc, k9)

    # Conv weight (F, C, 3, 3) -> (9C, F) with row order (kh, kw, c); bias -> (1, F).
    wc9 = jnp.transpose(w_conv, (2, 3, 1, 0)).reshape(k9, n_feat).astype(jnp.float32)
    bc2 = b_conv.reshape(1, n_feat).astype(jnp.float32)

    # Block-diagonal mean-pool selector (identical for every grid step).
    row_w = jnp.where(jnp.arange(nacc) < hw, 1.0 / hw, 0.0).astype(jnp.float32)
    sel = jnp.kron(jnp.eye(BB, dtype=jnp.float32), row_w.reshape(1, nacc))   # (BB, BB*NACC)

    # Fused head: [base classifier W^T padded to NCP | fc_side feature W^T padded to NSP].
    wb_pad = jnp.pad(wb, ((0, 0), (0, ncp - n_classes)))
    bb_pad = jnp.pad(bb.reshape(1, n_classes), ((0, 0), (0, ncp - n_classes)))
    wsf_pad = jnp.pad(wsf, ((0, 0), (0, nsp - n_side)))
    bs_pad = jnp.pad(bs.reshape(1, n_side), ((0, 0), (0, nsp - n_side)))
    w_head = jnp.concatenate([wb_pad, wsf_pad], axis=1).astype(jnp.float32)  # (F, NCP+NSP)
    b_head = jnp.concatenate([bb_pad, bs_pad], axis=1).astype(jnp.float32)   # (1, NCP+NSP)

    # fc_side one-hot(y) part transposed, class-padded; hoist max / exp to the wrapper.
    wsct_nc = jnp.pad(wsc.T.astype(jnp.float32), ((0, 0), (0, ncp - n_classes)))  # (ns, NCP)
    wsct = jnp.concatenate(
        [wsct_nc, jnp.full((nsp - n_side, ncp), -1e30, jnp.float32)], axis=0)     # (NSP, NCP)
    mw = jnp.max(wsct, axis=0, keepdims=True)                                     # (1, NCP)
    e_wsct = jnp.exp(wsct - mw)                                                   # (NSP, NCP)

    # Additive class-padding mask (replaces per-step iota + where).
    cmask = jnp.where(jnp.arange(ncp) < n_classes, 0.0, -1e30)
    cmask = cmask.astype(jnp.float32).reshape(1, ncp)

    # Per-sample z one-hot and wsc[:, z]^T (the only z-dependent constants), hoisted.
    z32 = z.astype(jnp.int32).reshape(B)
    zoh = jax.nn.one_hot(z32, nsp, dtype=jnp.float32)                             # (B, NSP)
    wz = wsct_nc[z32]                                                             # (B, NCP)
    zoh = jnp.pad(zoh, ((0, Bp - B), (0, 0))).reshape(n_steps, BB, nsp)
    wz = jnp.pad(wz, ((0, Bp - B), (0, 0))).reshape(n_steps, BB, ncp)

    kernel = functools.partial(_side_info_kernel, ncp=ncp)

    grid_spec = pltpu.PrefetchScalarGridSpec(
        num_scalar_prefetch=0,
        grid=(n_steps,),
        in_specs=[
            pl.BlockSpec((BB * nacc, k9), lambda i: (i, 0)),            # im2col patches
            pl.BlockSpec((k9, n_feat), lambda i: (0, 0)),               # conv weight
            pl.BlockSpec((1, n_feat), lambda i: (0, 0)),                # conv bias
            pl.BlockSpec((BB, BB * nacc), lambda i: (0, 0)),            # pool selector
            pl.BlockSpec((n_feat, ncp + nsp), lambda i: (0, 0)),        # fused head W
            pl.BlockSpec((1, ncp + nsp), lambda i: (0, 0)),             # fused head b
            pl.BlockSpec((nsp, ncp), lambda i: (0, 0)),                 # exp(wsc^T - mw)
            pl.BlockSpec((1, ncp), lambda i: (0, 0)),                   # mw
            pl.BlockSpec((1, ncp), lambda i: (0, 0)),                   # class mask
            pl.BlockSpec((1, BB, nsp), lambda i: (i, 0, 0)),            # one-hot(z)
            pl.BlockSpec((1, BB, ncp), lambda i: (i, 0, 0)),            # wsc[:, z]^T
        ],
        out_specs=pl.BlockSpec((1, BB, ncp), lambda i: (i, 0, 0)),
    )

    out = pl.pallas_call(
        kernel,
        grid_spec=grid_spec,
        out_shape=jax.ShapeDtypeStruct((n_steps, BB, ncp), jnp.float32),
        compiler_params=pltpu.CompilerParams(dimension_semantics=("parallel",)),
    )(xcol, wc9, bc2, sel, w_head, b_head, e_wsct, mw, cmask, zoh, wz)

    return out.reshape(Bp, ncp)[:B, :n_classes]


def reference_forward(x, z, params):
    """Pure-JAX mirror of the PyTorch predict_with_side, for correctness checking."""
    w_conv, b_conv, wb, bb, wsf, wsc, bs = params
    conv = jax.lax.conv_general_dilated(
        x, w_conv, window_strides=(1, 1), padding='SAME',
        dimension_numbers=('NCHW', 'OIHW', 'NCHW'))
    conv = jnp.maximum(conv + b_conv.reshape(1, -1, 1, 1), 0.0)
    feat = jnp.mean(conv, axis=(2, 3))                                  # (B, F)
    base = jax.nn.log_softmax(feat @ wb + bb, axis=-1)                  # (B, nc)
    side = feat @ wsf + bs                                              # (B, ns)
    zlog = jax.nn.log_softmax(side[:, None, :] + wsc[None, :, :], axis=-1)
    comb = jax.nn.log_softmax(base[:, :, None] + zlog, axis=1)          # (B, nc, ns)
    return comb[jnp.arange(x.shape[0]), :, z]


if __name__ == "__main__":
    B, C, H, W = 2, 4, 16, 16
    n_feat, n_classes, n_side = 32, 8, 4

    key = jax.random.PRNGKey(0)
    kx, kz, k0, k1, k2, k3, k4, k5, k6 = jax.random.split(key, 9)

    # deterministic example inputs
    x = jax.random.normal(kx, (B, C, H, W), dtype=jnp.float32)
    z = jax.random.randint(kz, (B,), 0, n_side, dtype=jnp.int32)

    # deterministic synthetic parameters (torch layouts; Linear weights pre-transposed)
    w_conv = 0.1 * jax.random.normal(k0, (n_feat, C, 3, 3), dtype=jnp.float32)   # Conv2d weight
    b_conv = 0.1 * jax.random.normal(k1, (n_feat,), dtype=jnp.float32)           # Conv2d bias
    wb = 0.1 * jax.random.normal(k2, (n_feat, n_classes), dtype=jnp.float32)     # base head W^T
    bb = 0.1 * jax.random.normal(k3, (1, n_classes), dtype=jnp.float32)
    wsf = 0.1 * jax.random.normal(k4, (n_feat, n_side), dtype=jnp.float32)       # fc_side W^T (features)
    wsc = 0.1 * jax.random.normal(k5, (n_classes, n_side), dtype=jnp.float32)    # fc_side W^T (one-hot y)
    bs = 0.1 * jax.random.normal(k6, (1, n_side), dtype=jnp.float32)
    params = (w_conv, b_conv, wb, bb, wsf, wsc, bs)

    out = side_information_forward(x, z, params)
    out = jax.block_until_ready(out)

    ref = reference_forward(x, z, params)
    np.testing.assert_allclose(np.asarray(out), np.asarray(ref), rtol=1e-4, atol=1e-4)
    print("KERNEL_OK")
</pallas_src>

<mosaic_0001>
module attributes {stable_mosaic.version = 11 : i64} {
  func.func @_side_info_kernel(%arg0: i32, %arg1: memref<256x36xf32, #tpu.memory_space<vmem>>, %arg2: memref<36x32xf32, #tpu.memory_space<vmem>>, %arg3: memref<1x32xf32, #tpu.memory_space<vmem>>, %arg4: memref<1x256xf32, #tpu.memory_space<vmem>>, %arg5: memref<32x256xf32, #tpu.memory_space<vmem>>, %arg6: memref<1x256xf32, #tpu.memory_space<vmem>>, %arg7: memref<128x128xf32, #tpu.memory_space<vmem>>, %arg8: memref<1x128xf32, #tpu.memory_space<vmem>>, %arg9: memref<1x128xf32, #tpu.memory_space<vmem>>, %arg10: memref<1x1x128xf32, #tpu.memory_space<vmem>>, %arg11: memref<1x1x128xf32, #tpu.memory_space<vmem>>, %arg12: memref<1x1x128xf32, #tpu.memory_space<vmem>>) attributes {dimension_semantics = [#tpu.dimension_semantics<parallel>], iteration_bounds = array<i64: 2>, scalar_prefetch = 0 : i64, scratch_operands = 0 : i64, tpu.core_type = #tpu.core_type<tc>, window_params = [{transform_indices = @transform_0, window_bounds = array<i64: 256, 36>}, {pipeline_mode = #tpu.pipeline_mode<synchronous>, transform_indices = @transform_1, window_bounds = array<i64: 36, 32>}, {pipeline_mode = #tpu.pipeline_mode<synchronous>, transform_indices = @transform_2, window_bounds = array<i64: 1, 32>}, {pipeline_mode = #tpu.pipeline_mode<synchronous>, transform_indices = @transform_3, window_bounds = array<i64: 1, 256>}, {pipeline_mode = #tpu.pipeline_mode<synchronous>, transform_indices = @transform_4, window_bounds = array<i64: 32, 256>}, {pipeline_mode = #tpu.pipeline_mode<synchronous>, transform_indices = @transform_5, window_bounds = array<i64: 1, 256>}, {pipeline_mode = #tpu.pipeline_mode<synchronous>, transform_indices = @transform_6, window_bounds = array<i64: 128, 128>}, {pipeline_mode = #tpu.pipeline_mode<synchronous>, transform_indices = @transform_7, window_bounds = array<i64: 1, 128>}, {pipeline_mode = #tpu.pipeline_mode<synchronous>, transform_indices = @transform_8, window_bounds = array<i64: 1, 128>}, {transform_indices = @transform_9, window_bounds = array<i64: 1, 1, 128>}, {transform_indices = @transform_10, window_bounds = array<i64: 1, 1, 128>}, {transform_indices = @transform_11, window_bounds = array<i64: 1, 1, 128>}]} {
    %c0 = arith.constant 0 : index
    %c0_0 = arith.constant 0 : index
    %0 = vector.load %arg1[%c0, %c0_0] : memref<256x36xf32, #tpu.memory_space<vmem>>, vector<256x36xf32>
    %c0_1 = arith.constant 0 : index
    %c0_2 = arith.constant 0 : index
    %1 = vector.load %arg2[%c0_1, %c0_2] : memref<36x32xf32, #tpu.memory_space<vmem>>, vector<36x32xf32>
    %cst = arith.constant dense<0.000000e+00> : vector<256x32xf32>
    %2 = tpu.matmul %0, %1, %cst {dimension_numbers = #tpu.dot_dimension_numbers<[1], [0], [0], [1], [0, 0, 1, 1], [], []>} : vector<256x36xf32>, vector<36x32xf32>, vector<256x32xf32> -> vector<256x32xf32>
    %c0_3 = arith.constant 0 : index
    %c0_4 = arith.constant 0 : index
    %3 = vector.load %arg3[%c0_3, %c0_4] : memref<1x32xf32, #tpu.memory_space<vmem>>, vector<1x32xf32>
    %4 = vector.broadcast %3 : vector<1x32xf32> to vector<256x32xf32>
    %5 = arith.addf %2, %4 : vector<256x32xf32>
    %cst_5 = arith.constant 0.000000e+00 : f32
    %6 = vector.broadcast %cst_5 : f32 to vector<256x32xf32>
    %7 = arith.maximumf %5, %6 : vector<256x32xf32>
    %c0_6 = arith.constant 0 : index
    %c0_7 = arith.constant 0 : index
    %8 = vector.load %arg4[%c0_6, %c0_7] : memref<1x256xf32, #tpu.memory_space<vmem>>, vector<1x256xf32>
    %cst_8 = arith.constant dense<0.000000e+00> : vector<1x32xf32>
    %9 = tpu.matmul %8, %7, %cst_8 {dimension_numbers = #tpu.dot_dimension_numbers<[1], [0], [0], [1], [0, 0, 1, 1], [], []>} : vector<1x256xf32>, vector<256x32xf32>, vector<1x32xf32> -> vector<1x32xf32>
    %c0_9 = arith.constant 0 : index
    %c0_10 = arith.constant 0 : index
    %10 = vector.load %arg5[%c0_9, %c0_10] : memref<32x256xf32, #tpu.memory_space<vmem>>, vector<32x256xf32>
    %cst_11 = arith.constant dense<0.000000e+00> : vector<1x256xf32>
    %11 = tpu.matmul %9, %10, %cst_11 {dimension_numbers = #tpu.dot_dimension_numbers<[1], [0], [0], [1], [0, 0, 1, 1], [], []>} : vector<1x32xf32>, vector<32x256xf32>, vector<1x256xf32> -> vector<1x256xf32>
    %c0_12 = arith.constant 0 : index
    %c0_13 = arith.constant 0 : index
    %12 = vector.load %arg6[%c0_12, %c0_13] : memref<1x256xf32, #tpu.memory_space<vmem>>, vector<1x256xf32>
    %13 = arith.addf %11, %12 : vector<1x256xf32>
    %14 = vector.extract_strided_slice %13 {offsets = [0, 0], sizes = [1, 128], strides = [1, 1]} : vector<1x256xf32> to vector<1x128xf32>
    %c0_14 = arith.constant 0 : index
    %c0_15 = arith.constant 0 : index
    %15 = vector.load %arg9[%c0_14, %c0_15] : memref<1x128xf32, #tpu.memory_space<vmem>>, vector<1x128xf32>
    %16 = arith.addf %14, %15 : vector<1x128xf32>
    %cst_16 = arith.constant dense<0xFF800000> : vector<1xf32>
    %17 = vector.multi_reduction <maximumf>, %16, %cst_16 [1] : vector<1x128xf32> to vector<1xf32>
    %18 = vector.shape_cast %17 : vector<1xf32> to vector<1x1xf32>
    %19 = vector.broadcast %18 : vector<1x1xf32> to vector<1x128xf32>
    %20 = arith.subf %16, %19 : vector<1x128xf32>
    %21 = math.exp %20 : vector<1x128xf32>
    %cst_17 = arith.constant dense<0.000000e+00> : vector<1xf32>
    %22 = vector.multi_reduction <add>, %21, %cst_17 [1] : vector<1x128xf32> to vector<1xf32>
    %23 = vector.shape_cast %22 : vector<1xf32> to vector<1x1xf32>
    %24 = math.log %23 : vector<1x1xf32>
    %25 = vector.broadcast %24 : vector<1x1xf32> to vector<1x128xf32>
    %26 = arith.subf %20, %25 : vector<1x128xf32>
    %27 = vector.extract_strided_slice %13 {offsets = [0, 128], sizes = [1, 128], strides = [1, 1]} : vector<1x256xf32> to vector<1x128xf32>
    %cst_18 = arith.constant dense<0xFF800000> : vector<1xf32>
    %28 = vector.multi_reduction <maximumf>, %27, %cst_18 [1] : vector<1x128xf32> to vector<1xf32>
    %29 = vector.shape_cast %28 : vector<1xf32> to vector<1x1xf32>
    %30 = vector.broadcast %29 : vector<1x1xf32> to vector<1x128xf32>
    %31 = arith.subf %27, %30 : vector<1x128xf32>
    %32 = math.exp %31 : vector<1x128xf32>
    %c0_19 = arith.constant 0 : index
    %c0_20 = arith.constant 0 : index
    %33 = vector.load %arg7[%c0_19, %c0_20] : memref<128x128xf32, #tpu.memory_space<vmem>>, vector<128x128xf32>
    %cst_21 = arith.constant dense<0.000000e+00> : vector<1x128xf32>
    %34 = tpu.matmul %32, %33, %cst_21 {dimension_numbers = #tpu.dot_dimension_numbers<[1], [0], [0], [1], [0, 0, 1, 1], [], []>} : vector<1x128xf32>, vector<128x128xf32>, vector<1x128xf32> -> vector<1x128xf32>
    %35 = math.log %34 : vector<1x128xf32>
    %36 = vector.broadcast %29 : vector<1x1xf32> to vector<1x128xf32>
    %37 = arith.addf %35, %36 : vector<1x128xf32>
    %c0_22 = arith.constant 0 : index
    %c0_23 = arith.constant 0 : index
    %38 = vector.load %arg8[%c0_22, %c0_23] : memref<1x128xf32, #tpu.memory_space<vmem>>, vector<1x128xf32>
    %39 = arith.addf %37, %38 : vector<1x128xf32>
    %c0_24 = arith.constant 0 : index
    %c0_25 = arith.constant 0 : index
    %c0_26 = arith.constant 0 : index
    %40 = vector.load %arg10[%c0_24, %c0_25, %c0_26] : memref<1x1x128xf32, #tpu.memory_space<vmem>>, vector<1x1x128xf32>
    %41 = vector.shape_cast %40 : vector<1x1x128xf32> to vector<1x128xf32>
    %42 = arith.mulf %27, %41 : vector<1x128xf32>
    %cst_27 = arith.constant dense<0.000000e+00> : vector<1xf32>
    %43 = vector.multi_reduction <add>, %42, %cst_27 [1] : vector<1x128xf32> to vector<1xf32>
    %44 = vector.shape_cast %43 : vector<1xf32> to vector<1x1xf32>
    %45 = vector.broadcast %44 : vector<1x1xf32> to vector<1x128xf32>
    %46 = arith.addf %26, %45 : vector<1x128xf32>
    %c0_28 = arith.constant 0 : index
    %c0_29 = arith.constant 0 : index
    %c0_30 = arith.constant 0 : index
    %47 = vector.load %arg11[%c0_28, %c0_29, %c0_30] : memref<1x1x128xf32, #tpu.memory_space<vmem>>, vector<1x1x128xf32>
    %48 = vector.shape_cast %47 : vector<1x1x128xf32> to vector<1x128xf32>
    %49 = arith.addf %46, %48 : vector<1x128xf32>
    %50 = arith.subf %49, %39 : vector<1x128xf32>
    %cst_31 = arith.constant dense<0xFF800000> : vector<1xf32>
    %51 = vector.multi_reduction <maximumf>, %50, %cst_31 [1] : vector<1x128xf32> to vector<1xf32>
    %52 = vector.shape_cast %51 : vector<1xf32> to vector<1x1xf32>
    %53 = vector.broadcast %52 : vector<1x1xf32> to vector<1x128xf32>
    %54 = arith.subf %50, %53 : vector<1x128xf32>
    %55 = math.exp %54 : vector<1x128xf32>
    %cst_32 = arith.constant dense<0.000000e+00> : vector<1xf32>
    %56 = vector.multi_reduction <add>, %55, %cst_32 [1] : vector<1x128xf32> to vector<1xf32>
    %57 = vector.shape_cast %56 : vector<1xf32> to vector<1x1xf32>
    %58 = math.log %57 : vector<1x1xf32>
    %59 = vector.broadcast %58 : vector<1x1xf32> to vector<1x128xf32>
    %60 = arith.subf %54, %59 : vector<1x128xf32>
    %c0_33 = arith.constant 0 : index
    %c0_34 = arith.constant 0 : index
    %c0_35 = arith.constant 0 : index
    %61 = vector.load %arg12[%c0_33, %c0_34, %c0_35] : memref<1x1x128xf32, #tpu.memory_space<vmem>>, vector<1x1x128xf32>
    %62 = vector.shape_cast %61 : vector<1x1x128xf32> to vector<1x128xf32>
    %63 = vector.shape_cast %60 : vector<1x128xf32> to vector<1x1x128xf32>
    tpu.vector_store %arg12[%c0_33, %c0_34, %c0_35], %63 {strides = array<i32>} : memref<1x1x128xf32, #tpu.memory_space<vmem>>, vector<1x1x128xf32>,
    return
  }
  func.func @transform_0(%arg0: i32) -> (i32, i32) {
    %c0_i32 = arith.constant 0 : i32
    %c0_i32_0 = arith.constant 0 : i32
    return %arg0, %c0_i32 : i32, i32
  }
  func.func @transform_1(%arg0: i32) -> (i32, i32) {
    %c0_i32 = arith.constant 0 : i32
    %c0_i32_0 = arith.constant 0 : i32
    %c0_i32_1 = arith.constant 0 : i32
    return %c0_i32, %c0_i32_0 : i32, i32
  }
  func.func @transform_2(%arg0: i32) -> (i32, i32) {
    %c0_i32 = arith.constant 0 : i32
    %c0_i32_0 = arith.constant 0 : i32
    %c0_i32_1 = arith.constant 0 : i32
    return %c0_i32, %c0_i32_0 : i32, i32
  }
  func.func @transform_3(%arg0: i32) -> (i32, i32) {
    %c0_i32 = arith.constant 0 : i32
    %c0_i32_0 = arith.constant 0 : i32
    %c0_i32_1 = arith.constant 0 : i32
    return %c0_i32, %c0_i32_0 : i32, i32
  }
  func.func @transform_4(%arg0: i32) -> (i32, i32) {
    %c0_i32 = arith.constant 0 : i32
    %c0_i32_0 = arith.constant 0 : i32
    %c0_i32_1 = arith.constant 0 : i32
    return %c0_i32, %c0_i32_0 : i32, i32
  }
  func.func @transform_5(%arg0: i32) -> (i32, i32) {
    %c0_i32 = arith.constant 0 : i32
    %c0_i32_0 = arith.constant 0 : i32
    %c0_i32_1 = arith.constant 0 : i32
    return %c0_i32, %c0_i32_0 : i32, i32
  }
  func.func @transform_6(%arg0: i32) -> (i32, i32) {
    %c0_i32 = arith.constant 0 : i32
    %c0_i32_0 = arith.constant 0 : i32
    %c0_i32_1 = arith.constant 0 : i32
    return %c0_i32, %c0_i32_0 : i32, i32
  }
  func.func @transform_7(%arg0: i32) -> (i32, i32) {
    %c0_i32 = arith.constant 0 : i32
    %c0_i32_0 = arith.constant 0 : i32
    %c0_i32_1 = arith.constant 0 : i32
    return %c0_i32, %c0_i32_0 : i32, i32
  }
  func.func @transform_8(%arg0: i32) -> (i32, i32) {
    %c0_i32 = arith.constant 0 : i32
    %c0_i32_0 = arith.constant 0 : i32
    %c0_i32_1 = arith.constant 0 : i32
    return %c0_i32, %c0_i32_0 : i32, i32
  }
  func.func @transform_9(%arg0: i32) -> (i32, i32, i32) {
    %c0_i32 = arith.constant 0 : i32
    %c0_i32_0 = arith.constant 0 : i32
    %c0_i32_1 = arith.constant 0 : i32
    return %arg0, %c0_i32, %c0_i32_0 : i32, i32, i32
  }
  func.func @transform_10(%arg0: i32) -> (i32, i32, i32) {
    %c0_i32 = arith.constant 0 : i32
    %c0_i32_0 = arith.constant 0 : i32
    %c0_i32_1 = arith.constant 0 : i32
    return %arg0, %c0_i32, %c0_i32_0 : i32, i32, i32
  }
  func.func @transform_11(%arg0: i32) -> (i32, i32, i32) {
    %c0_i32 = arith.constant 0 : i32
    %c0_i32_0 = arith.constant 0 : i32
    %c0_i32_1 = arith.constant 0 : i32
    return %arg0, %c0_i32, %c0_i32_0 : i32, i32, i32
  }
}

</mosaic_0001>

<bundles_post_ra>
// kernel: tpu_custom_call.1
= control target key start
LH: loop header
LB: loop body
LE: loop exit
PB: predicated region body
PF: predicated region fallthrough
CT: control target
= control target key end

     0   :  { %s1539_s0 = inlined_call_operand.vmem [shape: f32[512,36], index: 0, kind: input, shape index: {}]   ;;  %s1540_s1 = inlined_call_operand.vmem [shape: f32[36,32], index: 1, kind: input, shape index: {}]   ;;  %s1541_s2 = inlined_call_operand.vmem [shape: f32[1,32], index: 2, kind: input, shape index: {}]   ;;  %s1542_s3 = inlined_call_operand.vmem [shape: f32[1,256], index: 3, kind: input, shape index: {}]   ;;  %s1543_s4 = inlined_call_operand.vmem [shape: f32[32,256], index: 4, kind: input, shape index: {}]   ;;  %s1544_s5 = inlined_call_operand.vmem [shape: f32[1,256], index: 5, kind: input, shape index: {}]   ;;  %s1545_s6 = inlined_call_operand.vmem [shape: f32[128,128], index: 6, kind: input, shape index: {}]   ;;  %s1546_s7 = inlined_call_operand.vmem [shape: f32[1,128], index: 7, kind: input, shape index: {}]   ;;  %s1547_s8 = inlined_call_operand.vmem [shape: f32[1,128], index: 8, kind: input, shape index: {}]   ;;  %s1548_s9 = inlined_call_operand.vmem [shape: f32[2,1,128], index: 9, kind: input, shape index: {}]   ;;  %s1549_s10 = inlined_call_operand.vmem [shape: f32[2,1,128], index: 10, kind: input, shape index: {}]   ;;  %s1550_s11 = inlined_call_operand.hbm [shape: f32[2,1,128], index: 11, kind: output, shape index: {}]  }
   0x1   :  { %1551 = sst [smem:[#allocation5_spill]] %s1539_s0 }
   0x2   :  { %1552 = sst [smem:[#allocation6_spill]] %s1540_s1 }
   0x3   :  { %16 = vsyncpa [#allocation3], 0 }
   0x4   :  { %18 = vsyncpa [#allocation3 + $0x1], 0  ;;  %s1209_s17 = smov 0   ;;  %s1211_s18 = smov 0  }
   0x5   :  { %s1213_s19 = smov 0   ;;  %s1215_s20 = smov 0  }
   0x6 LB: > { %s1230_s21 = sadd.s32 4294967295, %s1147_s20   ;;  %s975_s22 = sadd.s32 4294967294, %s1147_s20   ;;  %s1147_s20 = sphi %s1215_s20, %s1560_s20   ;;  %s1143_s19 = sphi %s1213_s19, %s1559_s19   ;;  %s1139_s18 = sphi %s1211_s18, %s1558_s18   ;;  %s1135_s17 = sphi %s1209_s17, %s1557_s17  }
   0x7   : > { %s1234_s23 = sadd.s32 1, %s1147_s20   ;;  %s277_s24 = sadd.s32 1, %s1143_s19 }
   0x8   : > { %s274_s25 = ssub.s32 %s1147_s20, %s1234_s23  ;;  %p287_p0 = scmp.ne.s32.totalorder %s1143_s19, %s1139_s18 }
   0x9   : > { %p275_p1 = scmp.eq.s32.totalorder %s274_s25, 0  ;;  %p288_p2 = scmp.eq.s32.totalorder %s1230_s21, 1 }
   0xa   : > { %p293_p3 = scmp.ne.s32.totalorder %s1139_s18, %s1135_s17  ;;  %p294_p4 = scmp.eq.s32.totalorder %s975_s22, 1 }
   0xb   : > { %s1245_s26 = scalar_select %p275_p1, %s1143_s19, %s277_s24  }
   0xc   : > { %p1247_p5 = por %p288_p2, %p287_p0  ;;  %p1251_p6 = por %p294_p4, %p293_p3 }
   0xd   : > { %p978_p7 = scmp.ge.s32.totalorder %s1147_s20, 1  ;;  %p357_p8 = scmp.lt.s32.totalorder %s1147_s20, 3 }
   0xf   : > { %p358_p9 = pnand %p978_p7, %p357_p8 }
  0x10   : > { %s1555_s1 = sld [smem:[#allocation6_spill]] (!%p358_p9)  ;;  %s979_s14 = sshll.u32 (!%p358_p9), %s1230_s21, 5 }
  0x11   : > { %361 = sbr.rel (%p358_p9) target bundleno = 1067 (0x42b), region = 64  ;;  %p403_p10 = scmp.lt.s32.totalorder (!%p358_p9), %s979_s14, 63 }
  0x12   : > { %s1556_s0 = sld [smem:[#allocation5_spill]] (!%p358_p9)  ;;  %p408_p11 = scmp.lt.s32.totalorder (!%p358_p9), %s1230_s21, 1 }
  0x13   : > { %s400_s29 = sand.u32 (!%p358_p9), 1, %s1139_s18   ;;  %s898_s13 = scalar_lea.hbm (!%p358_p9), %s1550_s11, %s1230_s21 }
  0x14   : > { %s902_s16 = sshll.u32 (!%p358_p9), %s898_s13, 4  ;;  %s903_s16 = int_to_ptr.hbm [resolvable:$true] %s902_s16 }
  0x15   : > { %s1099_s24 = sshra.s32 (!%p358_p9), %s903_s16, 4  ;;  %s1100_s24 = int_to_ptr.hbm [resolvable:$true] %s1099_s24 }
  0x16   : > { %v450_v0 = vld [vmem:[%s1555_s1 + $0x20] sm:$0xf]  ;;  %vm552_vm0 = vcmask 1043456   ;;  %v449_v1 = vld [vmem:[%s1555_s1 + $0x18] sm:$0xff]  ;;  %v448_v2 = vld [vmem:[%s1555_s1 + $0x10] sm:$0xff]  ;;  %s1562_s14 = smov (!%p403_p10, %s979_s14), 63  ;;  %p1106_p1 = scmp.lt.s32.totalorder %s1100_s24, %s1550_s11 }
  0x17   : > { %981 = vmatpush.msk.msra.mxu0 %vm552_vm0, %v450_v0  ;;  %1018 = vmatpush.msk.msra.mxu1 %vm552_vm0, %v450_v0  ;;  %v447_v3 = vld [vmem:[%s1555_s1 + $0x8] sm:$0xff]  ;;  %s980_s25 = sshll.u32 %s1562_s14, 3  ;;  %v446_v4 = vld [vmem:[%s1555_s1] sm:$0xff]  ;;  %vm455_vm1 = vcmask 293888   ;;  %vm761_vm2 = vcmask 261120   ;;  %vm807_vm3 = vcmask 1040384  }
  0x18   : > { %1019 = vmatpush.msk.msra.mxu2 %vm552_vm0, %v450_v0  ;;  %1020 = vmatpush.msk.msra.mxu3 %vm552_vm0, %v450_v0  ;;  %s1276_s15 = scalar_lea.vmem %s1556_s0, %s980_s25  ;;  %v1359_v51 = vld [vmem:[%s1541_s2] ss:$0 sm:$0xff]  ;;  %s1101_s25 = scalar_lea.hbm %s1100_s24, 1 }
  0x19   : > { %568 = vmatpush.msra.mxu0 %v449_v1  ;;  %1021 = vmatpush.msra.mxu1 %v449_v1  ;;  %v414_v5 = vld [vmem:[%s1276_s15] sm:$0xff]  ;;  %v424_v6 = vld [vmem:[%s1276_s15 + $0x50] sm:$0xff]  ;;  %v433_v7 = vld [vmem:[%s1276_s15 + $0x98] sm:$0xff]  ;;  %s409_s30 = scalar_select %p408_p11, %s1230_s21, 1 }
  0x1a   : > { %1022 = vmatpush.msra.mxu2 %v449_v1  ;;  %1023 = vmatpush.msra.mxu3 %v449_v1  ;;  %v442_v8 = vld [vmem:[%s1276_s15 + $0xe0] sm:$0xff]  ;;  %v415_v9 = vld [vmem:[%s1276_s15 + $0x8] sm:$0xff]  ;;  %v425_v10 = vld [vmem:[%s1276_s15 + $0x58] sm:$0xff]  ;;  %p1102_p12 = scmp.ne.s32.totalorder %s1100_s24, %s1101_s25  ;;  %s1105_s21 = scalar_lea.hbm %s1550_s11, 2 }
  0x1b   : > { %569 = vmatpush.msra.mxu0 %v448_v2  ;;  %1024 = vmatpush.msra.mxu1 %v448_v2  ;;  %v434_v11 = vld [vmem:[%s1276_s15 + $0xa0] sm:$0xff]  ;;  %v443_v12 = vld [vmem:[%s1276_s15 + $0xe8] sm:$0xff]  ;;  %v416_v13 = vld [vmem:[%s1276_s15 + $0x10] sm:$0xff]  ;;  %s413_s22 = scalar_lea.vmem %s1549_s10, %s409_s30  ;;  %p1107_p2 = scmp.lt.s32.totalorder %s1105_s21, %s1101_s25 }
  0x1c   : > { %1025 = vmatpush.msra.mxu2 %v448_v2  ;;  %1026 = vmatpush.msra.mxu3 %v448_v2  ;;  %v426_v14 = vld [vmem:[%s1276_s15 + $0x60] sm:$0xff]  ;;  %v435_v15 = vld [vmem:[%s1276_s15 + $0xa8] sm:$0xff]  ;;  %v444_v16 = vld [vmem:[%s1276_s15 + $0xf0] sm:$0xff]  ;;  %p1103_p13 = pnand %p1102_p12, %p1247_p5 }
  0x1d   : > { %570 = vmatpush.msra.mxu0 %v447_v3  ;;  %1027 = vmatpush.msra.mxu1 %v447_v3  ;;  %v417_v17 = vld [vmem:[%s1276_s15 + $0x18] sm:$0xff]  ;;  %v427_v18 = vld [vmem:[%s1276_s15 + $0x68] sm:$0xff]  ;;  %v436_v19 = vld [vmem:[%s1276_s15 + $0xb0] sm:$0xff]  ;;  %p1108_p3 = por %p1107_p2, %p1106_p1 }
  0x1e   : > { %1028 = vmatpush.msra.mxu2 %v447_v3  ;;  %1029 = vmatpush.msra.mxu3 %v447_v3  ;;  %v445_v20 = vld [vmem:[%s1276_s15 + $0xf8] sm:$0xff]  ;;  %v418_v21 = vld [vmem:[%s1276_s15 + $0x20] sm:$0xff]  ;;  %v428_v22 = vld [vmem:[%s1276_s15 + $0x70] sm:$0xff]  ;;  %p1104_p0 = pneg %p1103_p13 }
  0x1f   : > { %571 = vmatpush.msra.mxu0 %v446_v4  ;;  %1030 = vmatpush.msra.mxu1 %v446_v4  ;;  %v437_v23 = vld [vmem:[%s1276_s15 + $0xb8] sm:$0xff]  ;;  %v419_v24 = vld [vmem:[%s1276_s15 + $0x28] sm:$0xff]  ;;  %v438_v26 = vld [vmem:[%s1276_s15 + $0xc0] sm:$0xff] }
  0x20   : > { %1031 = vmatpush.msra.mxu2 %v446_v4  ;;  %1032 = vmatpush.msra.mxu3 %v446_v4  ;;  %v429_v25 = vld [vmem:[%s1276_s15 + $0x78] sm:$0xff]  ;;  %v420_v27 = vld [vmem:[%s1276_s15 + $0x30] sm:$0xff]  ;;  %v430_v28 = vld [vmem:[%s1276_s15 + $0x80] sm:$0xff]  ;;  %p1109_p4 = pnand %p1108_p3, %p1104_p0 }
  0x21   : > { %982 = vmatmul.msk.f32.vlgmr.msra.gmra.mxu0 %vm455_vm1, %v414_v5  ;;  %992 = vmatmul.msk.f32.vlgmr.msra.gmra.mxu1 %vm455_vm1, %v424_v6  ;;  %v439_v29 = vld [vmem:[%s1276_s15 + $0xc8] sm:$0xff]  ;;  %v421_v30 = vld [vmem:[%s1276_s15 + $0x38] sm:$0xff]  ;;  %v440_v32 = vld [vmem:[%s1276_s15 + $0xd0] sm:$0xff] }
  0x22   : > { %1001 = vmatmul.msk.f32.vlgmr.msra.gmra.mxu2 %vm455_vm1, %v433_v7  ;;  %1010 = vmatmul.msk.f32.vlgmr.msra.gmra.mxu3 %vm455_vm1, %v442_v8  ;;  %v431_v31 = vld [vmem:[%s1276_s15 + $0x88] sm:$0xff]  ;;  %v422_v33 = vld [vmem:[%s1276_s15 + $0x40] sm:$0xff]  ;;  %v432_v34 = vld [vmem:[%s1276_s15 + $0x90] sm:$0xff] }
  0x23   : > { %v441_v35 = vld [vmem:[%s1276_s15 + $0xd8] sm:$0xff]  ;;  %v423_v36 = vld [vmem:[%s1276_s15 + $0x48] sm:$0xff]  ;;  %s410_s15 = scalar_lea.vmem %s1548_s9, %s409_s30 }
  0x29   : > { %983 = vmatmul.msk.f32.gmra.mxu0 %vm455_vm1, %v415_v9  ;;  %993 = vmatmul.msk.f32.gmra.mxu1 %vm455_vm1, %v425_v10 }
  0x2a   : > { %1002 = vmatmul.msk.f32.gmra.mxu2 %vm455_vm1, %v434_v11  ;;  %1011 = vmatmul.msk.f32.gmra.mxu3 %vm455_vm1, %v443_v12 }
  0x31   : > { %984 = vmatmul.msk.f32.gmra.mxu0 %vm455_vm1, %v416_v13  ;;  %994 = vmatmul.msk.f32.gmra.mxu1 %vm455_vm1, %v426_v14 }
  0x32   : > { %1003 = vmatmul.msk.f32.gmra.mxu2 %vm455_vm1, %v435_v15  ;;  %1012 = vmatmul.msk.f32.gmra.mxu3 %vm455_vm1, %v444_v16 }
  0x39   : > { %985 = vmatmul.msk.f32.gmra.mxu0 %vm455_vm1, %v417_v17  ;;  %995 = vmatmul.msk.f32.gmra.mxu1 %vm455_vm1, %v427_v18 }
  0x3a   : > { %1004 = vmatmul.msk.f32.gmra.mxu2 %vm455_vm1, %v436_v19  ;;  %1013 = vmatmul.msk.f32.gmra.mxu3 %vm455_vm1, %v445_v20 }
  0x41   : > { %986 = vmatmul.msk.f32.gmra.mxu0 %vm455_vm1, %v418_v21  ;;  %996 = vmatmul.msk.f32.gmra.mxu1 %vm455_vm1, %v428_v22  ;;  %v753_v22 = vld [vmem:[%s1543_s4 + $0x30] sm:$0xff] }
  0x42   : > { %1005 = vmatmul.msk.f32.gmra.mxu2 %vm455_vm1, %v437_v23  ;;  %v751_v23 = vld [vmem:[%s1543_s4 + $0x20] sm:$0xff]  ;;  %777 = vmatpush.msrb.mxu3 %v753_v22  ;;  %v839_v22 = vld [vmem:[%s1545_s6 + $0x68] sm:$0xff] }
  0x44   : > { %778 = vmatpush.msrb.mxu3 %v751_v23  ;;  %v838_v23 = vld [vmem:[%s1545_s6 + $0x60] sm:$0xff] }
  0x49   : > { %987 = vmatmul.msk.f32.gmra.mxu0 %vm455_vm1, %v419_v24  ;;  %997 = vmatmul.msk.f32.gmra.mxu1 %vm455_vm1, %v429_v25 }
  0x4a   : > { %1006 = vmatmul.msk.f32.gmra.mxu2 %vm455_vm1, %v438_v26 }
  0x51   : > { %988 = vmatmul.msk.f32.gmra.mxu0 %vm455_vm1, %v420_v27  ;;  %998 = vmatmul.msk.f32.gmra.mxu1 %vm455_vm1, %v430_v28 }
  0x52   : > { %1007 = vmatmul.msk.f32.gmra.mxu2 %vm455_vm1, %v439_v29 }
  0x59   : > { %989 = vmatmul.msk.f32.gmra.mxu0 %vm455_vm1, %v421_v30  ;;  %999 = vmatmul.msk.f32.gmra.mxu1 %vm455_vm1, %v431_v31 }
  0x5a   : > { %1008 = vmatmul.msk.f32.gmra.mxu2 %vm455_vm1, %v440_v32 }
  0x61   : > { %990 = vmatmul.msk.f32.gmra.mxu0 %vm455_vm1, %v422_v33  ;;  %1000 = vmatmul.msk.f32.gmra.mxu1 %vm455_vm1, %v432_v34 }
  0x62   : > { %1009 = vmatmul.msk.f32.gmra.mxu2 %vm455_vm1, %v441_v35 }
  0x69   : > { %991 = vmatmul.msk.f32.gmra.mxu0 %vm455_vm1, %v423_v36 }
  0x9e   : > { %v1342_v37 = vpop.f32.mrf.mxu0  ;;  %v603_v38 = vpop.f32.mrf.mxu1 }
  0x9f   : > { %v604_v13 = vadd.f32 %v1359_v51, %v603_v38 }
  0xa1   : > { %v679_v16 = vmax.f32 %v604_v13, 0.0  ;;  %v754_v13 = vld [vmem:[%s1543_s4 + $0x38] sm:$0xff] }
  0xa5   : > { %v1344_v39 = vpop.f32.mrf.mxu2  ;;  %v657_v40 = vpop.f32.mrf.mxu3 }
  0xa6   : > { %v1346_v41 = vpop.f32.mrf.mxu0  ;;  %v606_v42 = vpop.f32.mrf.mxu1  ;;  %v658_v59 = vadd.f32 %v1359_v51, %v657_v40 }
  0xa7   : > { %v607_v10 = vadd.f32 %v1359_v51, %v606_v42 }
  0xa8   : > { %v697_v63 = vmax.f32 %v658_v59, 0.0 }
  0xa9   : > { %v680_v15 = vmax.f32 %v607_v10, 0.0 }
  0xad   : > { %v1348_v43 = vpop.f32.mrf.mxu2  ;;  %v660_v44 = vpop.f32.mrf.mxu3 }
  0xae   : > { %v1350_v45 = vpop.f32.mrf.mxu0  ;;  %v609_v46 = vpop.f32.mrf.mxu1  ;;  %v661_v55 = vadd.f32 %v1359_v51, %v660_v44 }
  0xaf   : > { %v610_v8 = vadd.f32 %v1359_v51, %v609_v46 }
  0xb0   : > { %v698_v62 = vmax.f32 %v661_v55, 0.0 }
  0xb1   : > { %v681_v14 = vmax.f32 %v610_v8, 0.0 }
  0xb5   : > { %v1352_v47 = vpop.f32.mrf.mxu2  ;;  %v663_v48 = vpop.f32.mrf.mxu3 }
  0xb6   : > { %v1354_v49 = vpop.f32.mrf.mxu0  ;;  %v612_v50 = vpop.f32.mrf.mxu1  ;;  %v664_v52 = vadd.f32 %v1359_v51, %v663_v48 }
  0xb7   : > { %v613_v4 = vadd.f32 %v1359_v51, %v612_v50  ;;  %v583_v59 = vadd.f32 %v1359_v51, %v1354_v49 }
  0xb8   : > { %v699_v60 = vmax.f32 %v664_v52, 0.0 }
  0xb9   : > { %v682_v9 = vmax.f32 %v613_v4, 0.0 }
  0xbd   : > { %v1362_v53 = vpop.f32.mrf.mxu2  ;;  %v666_v54 = vpop.f32.mrf.mxu3 }
  0xbe   : > { %v667_v56 = vadd.f32 %v1359_v51, %v666_v54  ;;  %v1366_v57 = vpop.f32.mrf.mxu0  ;;  %v615_v58 = vpop.f32.mrf.mxu1  ;;  %v640_v50 = vadd.f32 %v1359_v51, %v1362_v53  ;;  %v634_v53 = vadd.f32 %v1359_v51, %v1348_v43 }
  0xbf   : > { %v616_v0 = vadd.f32 %v1359_v51, %v615_v58  ;;  %v586_v54 = vadd.f32 %v1359_v51, %v1366_v57  ;;  %v580_v57 = vadd.f32 %v1359_v51, %v1350_v45 }
  0xc0   : > { %v700_v61 = vmax.f32 %v667_v56, 0.0  ;;  %v637_v56 = vadd.f32 %v1359_v51, %v1352_v47  ;;  %v631_v47 = vadd.f32 %v1359_v51, %v1344_v39  ;;  %v689_v43 = vmax.f32 %v634_v53, 0.0 }
  0xc1   : > { %v683_v6 = vmax.f32 %v616_v0, 0.0  ;;  %v671_v45 = vmax.f32 %v580_v57, 0.0 }
  0xc2   : > { %727 = vmatpush.msrb.mxu2 %v700_v61  ;;  %v690_v0 = vmax.f32 %v637_v56, 0.0  ;;  %v688_v4 = vmax.f32 %v631_v47, 0.0  ;;  %v867_v47 = vld [vmem:[%s410_s15] sm:$0x1]  ;;  %s401_s15 = scalar_lea.vmem [#allocation2], %s400_s29 }
  0xc3   : > { %s900_s14 = sshll.u32 %s401_s15, 4  ;;  %s901_s14 = int_to_ptr.vmem [resolvable:$true] %s900_s14 }
  0xc4   : > { %728 = vmatpush.msrb.mxu2 %v699_v60 }
  0xc5   : > { %v642_v1 = vpop.f32.mrf.mxu2 }
  0xc6   : > { %729 = vmatpush.msrb.mxu2 %v698_v62  ;;  %v588_v2 = vpop.f32.mrf.mxu0  ;;  %v618_v3 = vpop.f32.mrf.mxu1  ;;  %v643_v42 = vadd.f32 %v1359_v51, %v642_v1  ;;  %v691_v62 = vmax.f32 %v640_v50, 0.0  ;;  %v577_v1 = vadd.f32 %v1359_v51, %v1346_v41  ;;  %v701_v41 = vld [vmem:[%s1542_s3] sm:$0x3]  ;;  %v829_v50 = vld [vmem:[%s1545_s6 + $0x18] sm:$0xff] }
  0xc7   : > { %v619_v5 = vadd.f32 %v1359_v51, %v618_v3  ;;  %v589_v46 = vadd.f32 %v1359_v51, %v588_v2  ;;  %v672_v2 = vmax.f32 %v583_v59, 0.0  ;;  %v574_v3 = vadd.f32 %v1359_v51, %v1342_v37 }
  0xc8   : > { %730 = vmatpush.msrb.mxu2 %v697_v63  ;;  %v692_v58 = vmax.f32 %v643_v42, 0.0  ;;  %v673_v63 = vmax.f32 %v586_v54, 0.0  ;;  %v703_v8 = vperm.slane %v701_v41, 0  ;;  %v704_v10 = vperm.slane %v701_v41, 1  ;;  %v827_v54 = vld [vmem:[%s1545_s6 + $0x8] sm:$0xff] }
  0xc9   : > { %v684_v7 = vmax.f32 %v619_v5, 0.0  ;;  %v674_v60 = vmax.f32 %v589_v46, 0.0  ;;  %v831_v46 = vld [vmem:[%s1545_s6 + $0x28] sm:$0xff]  ;;  %v873_v41 = vld [vmem:[%s413_s22] sm:$0x1]  ;;  %s890_s22 = scalar_lea.sflag [#allocation3], %s400_s29 }
  0xcb   : > { %707 = vmatpush.msrb.mxu1 %v684_v7 }
  0xcd   : > { %v645_v11 = vpop.f32.mrf.mxu2  ;;  %708 = vmatpush.msrb.mxu1 %v683_v6  ;;  %v670_v6 = vmax.f32 %v577_v1, 0.0 }
  0xce   : > { %v591_v12 = vpop.f32.mrf.mxu0  ;;  %v1375_v20 = vpop.f32.mrf.mxu1  ;;  %v646_v35 = vadd.f32 %v1359_v51, %v645_v11 }
  0xcf   : > { %709 = vmatpush.msrb.mxu1 %v682_v9  ;;  %v592_v38 = vadd.f32 %v1359_v51, %v591_v12  ;;  %v622_v7 = vadd.f32 %v1359_v51, %v1375_v20  ;;  %v669_v9 = vmax.f32 %v574_v3, 0.0  ;;  %v749_v12 = vld [vmem:[%s1543_s4 + $0x10] sm:$0xff]  ;;  %v841_v20 = vld [vmem:[%s1545_s6 + $0x78] sm:$0xff] }
  0xd0   : > { %v693_v52 = vmax.f32 %v646_v35, 0.0  ;;  %779 = vmatpush.msrb.mxu3 %v749_v12 }
  0xd1   : > { %710 = vmatpush.msrb.mxu1 %v681_v14  ;;  %v675_v55 = vmax.f32 %v592_v38, 0.0  ;;  %v685_v11 = vmax.f32 %v622_v7, 0.0  ;;  %v752_v14 = vld [vmem:[%s1543_s4 + $0x28] sm:$0xff]  ;;  %v865_v7 = vld [vmem:[%s1546_s7] sm:$0x1] }
  0xd3   : > { %711 = vmatpush.msrb.mxu1 %v680_v15  ;;  %v750_v15 = vld [vmem:[%s1543_s4 + $0x18] sm:$0xff] }
  0xd5   : > { %v648_v17 = vpop.f32.mrf.mxu2  ;;  %712 = vmatpush.msrb.mxu1 %v679_v16  ;;  %v748_v16 = vld [vmem:[%s1543_s4 + $0x8] sm:$0xff] }
  0xd6   : > { %v594_v18 = vpop.f32.mrf.mxu0  ;;  %v624_v30 = vpop.f32.mrf.mxu1  ;;  %v649_v31 = vadd.f32 %v1359_v51, %v648_v17 }
  0xd7   : > { %v595_v33 = vadd.f32 %v1359_v51, %v594_v18  ;;  %v625_v5 = vadd.f32 %v1359_v51, %v624_v30  ;;  %v755_v30 = vld [vmem:[%s1544_s5] sm:$0x3] }
  0xd8   : > { %v694_v44 = vmax.f32 %v649_v31, 0.0  ;;  %v832_v31 = vld [vmem:[%s1545_s6 + $0x30] sm:$0xff] }
  0xd9   : > { %v676_v48 = vmax.f32 %v595_v33, 0.0  ;;  %v686_v37 = vmax.f32 %v625_v5, 0.0  ;;  %v757_v33 = vperm.slane %v755_v30, 0 }
  0xdd   : > { %v651_v19 = vpop.f32.mrf.mxu2 }
  0xde   : > { %v597_v21 = vpop.f32.mrf.mxu0  ;;  %v652_v25 = vadd.f32 %v1359_v51, %v651_v19  ;;  %v627_v61 = vpop.f32.mrf.mxu1 }
  0xdf   : > { %v598_v28 = vadd.f32 %v1359_v51, %v597_v21  ;;  %v628_v49 = vadd.f32 %v1359_v51, %v627_v61  ;;  %v840_v21 = vld [vmem:[%s1545_s6 + $0x70] sm:$0xff] }
  0xe0   : > { %v695_v36 = vmax.f32 %v652_v25, 0.0  ;;  %v836_v25 = vld [vmem:[%s1545_s6 + $0x50] sm:$0xff] }
  0xe1   : > { %v677_v40 = vmax.f32 %v598_v28, 0.0  ;;  %v687_v39 = vmax.f32 %v628_v49, 0.0  ;;  %v834_v28 = vld [vmem:[%s1545_s6 + $0x40] sm:$0xff] }
  0xe5   : > { %v654_v24 = vpop.f32.mrf.mxu2 }
  0xe6   : > { %v655_v26 = vadd.f32 %v1359_v51, %v654_v24  ;;  %v600_v27 = vpop.f32.mrf.mxu0  ;;  %v837_v24 = vld [vmem:[%s1545_s6 + $0x58] sm:$0xff] }
  0xe7   : > { %v601_v29 = vadd.f32 %v1359_v51, %v600_v27  ;;  %v747_v51 = vld [vmem:[%s1543_s4] sm:$0xff] }
  0xe8   : > { %v696_v32 = vmax.f32 %v655_v26, 0.0  ;;  %780 = vmatpush.msrb.mxu3 %v747_v51  ;;  %v835_v26 = vld [vmem:[%s1545_s6 + $0x48] sm:$0xff] }
  0xe9   : > { %v678_v34 = vmax.f32 %v601_v29, 0.0  ;;  %v833_v29 = vld [vmem:[%s1545_s6 + $0x38] sm:$0xff] }
  0xea   : > { %731 = vmatpush.msrb.mxu2 %v696_v32  ;;  %797 = vmatpush.msra.mxu3 %v754_v13  ;;  %v758_v32 = vperm.slane %v755_v30, 1 }
  0xeb   : > { %713 = vmatpush.msrb.mxu1 %v678_v34 }
  0xec   : > { %732 = vmatpush.msrb.mxu2 %v695_v36  ;;  %798 = vmatpush.msra.mxu3 %v752_v14 }
  0xed   : > { %714 = vmatpush.msrb.mxu1 %v677_v40  ;;  %v805_v40 = vld [vmem:[%s1547_s8] sm:$0x1] }
  0xee   : > { %733 = vmatpush.msrb.mxu2 %v694_v44  ;;  %799 = vmatpush.msra.mxu3 %v750_v15 }
  0xef   : > { %715 = vmatpush.msrb.mxu1 %v676_v48  ;;  %v830_v48 = vld [vmem:[%s1545_s6 + $0x20] sm:$0xff] }
  0xf0   : > { %734 = vmatpush.msrb.mxu2 %v693_v52  ;;  %800 = vmatpush.msra.mxu3 %v748_v16  ;;  %v828_v52 = vld [vmem:[%s1545_s6 + $0x10] sm:$0xff] }
  0xf1   : > { %716 = vmatpush.msrb.mxu1 %v675_v55  ;;  %v826_v55 = vld [vmem:[%s1545_s6] sm:$0xff] }
  0xf2   : > { %735 = vmatpush.msrb.mxu2 %v692_v58 }
  0xf3   : > { %717 = vmatpush.msrb.mxu1 %v674_v60 }
  0xf4   : > { %736 = vmatpush.msrb.mxu2 %v691_v62 }
  0xf5   : > { %718 = vmatpush.msrb.mxu1 %v673_v63 }
  0xf6   : > { %737 = vmatpush.msrb.mxu2 %v690_v0 }
  0xf7   : > { %719 = vmatpush.msrb.mxu1 %v672_v2 }
  0xf8   : > { %738 = vmatpush.msrb.mxu2 %v689_v43 }
  0xf9   : > { %720 = vmatpush.msrb.mxu1 %v671_v45 }
  0xfa   : > { %739 = vmatpush.msrb.mxu2 %v688_v4 }
  0xfb   : > { %721 = vmatpush.msrb.mxu1 %v670_v6 }
  0xfc   : > { %740 = vmatpush.msrb.mxu2 %v687_v39 }
  0xfd   : > { %722 = vmatpush.msrb.mxu1 %v669_v9 }
  0xfe   : > { %741 = vmatpush.msrb.mxu2 %v686_v37  ;;  %723 = vmatmul.f32.vlgmr.msrb.gmra.mxu1 %v703_v8 }
 0x100   : > { %742 = vmatpush.msrb.mxu2 %v685_v11 }
 0x101   : > { %743 = vmatmul.f32.vlgmr.msrb.gmra.mxu2 %v704_v10 }
 0x17b   : > { %v724_v17 = vpop.f32.mrf.mxu1 }
 0x184   : > { %v744_v18 = vpop.f32.mrf.mxu2 }
 0x185   : > { %v745_v19 = vadd.f32 %v744_v18, %v724_v17 }
 0x187   : > { %1014 = vmatmul.msk.f32.vlgmr.msrb.gmra.mxu3 %vm761_vm2, %v745_v19 }
 0x188   : > { %842 = vmatpush.msrb.mxu3 %v841_v20 }
 0x18a   : > { %843 = vmatpush.msrb.mxu3 %v840_v21 }
 0x18c   : > { %844 = vmatpush.msrb.mxu3 %v839_v22 }
 0x18e   : > { %845 = vmatpush.msrb.mxu3 %v838_v23 }
 0x18f   : > { %1015 = vmatmul.msk.f32.vlgmr.msra.gmra.mxu3 %vm761_vm2, %v745_v19 }
 0x190   : > { %846 = vmatpush.msrb.mxu3 %v837_v24 }
 0x192   : > { %847 = vmatpush.msrb.mxu3 %v836_v25 }
 0x194   : > { %848 = vmatpush.msrb.mxu3 %v835_v26 }
 0x196   : > { %849 = vmatpush.msrb.mxu3 %v834_v28 }
 0x198   : > { %850 = vmatpush.msrb.mxu3 %v833_v29 }
 0x19a   : > { %851 = vmatpush.msrb.mxu3 %v832_v31 }
 0x19c   : > { %852 = vmatpush.msrb.mxu3 %v831_v46 }
 0x19e   : > { %853 = vmatpush.msrb.mxu3 %v830_v48 }
 0x1a0   : > { %854 = vmatpush.msrb.mxu3 %v829_v50 }
 0x1a2   : > { %855 = vmatpush.msrb.mxu3 %v828_v52 }
 0x1a4   : > { %856 = vmatpush.msrb.mxu3 %v827_v54 }
 0x1a6   : > { %857 = vmatpush.msrb.mxu3 %v826_v55 }
 0x20a   : > { %v782_v27 = vpop.f32.mrf.mxu3 }
 0x20b   : > { %v783_v36 = vadd.f32 %v782_v27, %v757_v33 }
 0x20d   : > { %v806_v42 = vadd.f32 %v805_v40, %v783_v36 }
 0x20f   : > { %v808_v44 = vsel %vm807_vm3, %v806_v42, -inf }
 0x212   : > { %v802_v34 = vpop.f32.mrf.mxu3 }
 0x213   : > { %v803_v35 = vadd.f32 %v802_v34, %v758_v32 }
 0x215   : > { %v820_v38 = vsel %vm807_vm3, %v803_v35, -inf  ;;  %v868_v0 = vmul.f32 %v867_v47, %v803_v35 }
 0x216   : > { %821 = vmax.xlane.f32.xlu0 %v820_v38 }
 0x217   : > { %v869_v49 = vsel %vm807_vm3, %v868_v0, 0.0 }
 0x21e   : > { %809 = vmax.xlane.f32.xlu0 %v808_v44 }
 0x289   : > { %v822_v56 = vpop.xlane.xlu0 %821 }
 0x28a   : > { %v823_v58 = vsub.f32 %v803_v35, %v822_v56 }
 0x28c   : > { %v824_v59 = vmul.f32 1.442695, %v823_v58 }
 0x28e   : > { %1073 = vpow2.f32 %v824_v59 }
 0x291   : > { %v810_v60 = vpop.xlane.xlu0 %809 }
 0x292   : > { %v811_v61 = vsub.f32 %v806_v42, %v810_v60 }
 0x294   : > { %v1074_v53 = vpop.eup %1073  ;;  %v812_v62 = vmul.f32 1.442695, %v811_v61 }
 0x295   : > { %858 = vmatmul.f32.vlgmr.msrb.gmra.mxu3 %v1074_v53 }
 0x296   : > { %1075 = vpow2.f32 %v812_v62 }
 0x29c   : > { %v1076_v57 = vpop.eup %1075 }
 0x29d   : > { %v814_v63 = vsel %vm807_vm3, %v1076_v57, 0.0 }
 0x29e   : > { %815 = vadd.xlane.f32.xlu1 %v814_v63 }
 0x2a6   : > { %870 = vadd.xlane.f32.xlu1 %v869_v49 }
 0x311   : > { %v816_v1 = vpop.xlane.xlu1 %815 }
 0x312   : > { %1077 = vlog2.f32 %v816_v1 }
 0x318   : > { %v1078_v2 = vpop.eup %1077  ;;  %v859_v43 = vpop.f32.mrf.mxu3 }
 0x319   : > { %v818_v3 = vmul.f32 0.6931472, %v1078_v2  ;;  %1079 = vlog2.f32 %v859_v43  ;;  %v871_v5 = vpop.xlane.xlu1 %870 }
 0x31b   : > { %v819_v45 = vsub.f32 %v811_v61, %v818_v3 }
 0x31d   : > { %v872_v6 = vadd.f32 %v871_v5, %v819_v45 }
 0x31f   : > { %v1080_v4 = vpop.eup %1079  ;;  %v874_v9 = vadd.f32 %v873_v41, %v872_v6 }
 0x320   : > { %v863_v39 = vmul.f32 0.6931472, %v1080_v4 }
 0x322   : > { %v864_v8 = vadd.f32 %v863_v39, %v822_v56 }
 0x324   : > { %v866_v37 = vadd.f32 %v865_v7, %v864_v8 }
 0x326   : > { %v875_v10 = vsub.f32 %v874_v9, %v866_v37 }
 0x328   : > { %v876_v11 = vsel %vm807_vm3, %v875_v10, -inf }
 0x329   : > { %877 = vmax.xlane.f32.xlu2 %v876_v11 }
 0x39c   : > { %v878_v12 = vpop.xlane.xlu2 %877 }
 0x39d   : > { %v879_v51 = vsub.f32 %v875_v10, %v878_v12 }
 0x39f   : > { %v880_v13 = vmul.f32 1.442695, %v879_v51 }
 0x3a1   : > { %1081 = vpow2.f32 %v880_v13 }
 0x3a7   : > { %v1082_v14 = vpop.eup %1081 }
 0x3a8   : > { %v882_v15 = vsel %vm807_vm3, %v1082_v14, 0.0 }
 0x3a9   : > { %883 = vadd.xlane.f32.xlu2 %v882_v15 }
 0x41c   : > { %v884_v16 = vpop.xlane.xlu2 %883 }
 0x41d   : > { %1083 = vlog2.f32 %v884_v16 }
 0x423   : > { %v1084_v17 = vpop.eup %1083 }
 0x424   : > { %v886_v18 = vmul.f32 0.6931472, %v1084_v17 }
 0x426   : > { %v887_v19 = vsub.f32 %v879_v51, %v886_v18 }
 0x428   : > { %888 = vst [vmem:[%s401_s15] sm:$0x1] %v887_v19 }
 0x429   : > { %1112 = shalt.err (!%p1109_p4)
}
 0x42a   : > { %1033 = dma.vmem_to_hbm [thread:$0]  (%p1247_p5), %s901_s14, 16, %s903_s16, %s890_s22  }
 0x42b PF: > { %p1039_p7 = scmp.ge.s32.totalorder %s1147_s20, 2  ;;  %s914_s29 = sand.u32 1, %s1135_s17  }
 0x42c   : > { %s915_s13 = scalar_lea.sflag [#allocation3], %s914_s29 }
 0x42d   : > { %p1036_p8 = pnand %p1039_p7, %p1251_p6 }
 0x42f   : > { %p1037_p9 = pneg %p1036_p8 }
 0x431   : > { %1130 = dma.done.wait (%p1037_p9), %s915_s13, 16  }
 0x432   : > { %1132 = vsyncadd (%p1037_p9), %s915_s13, 4294967280  ;;  %p21_p10 = scmp.ge.s32.totalorder %s1234_s23, 4   ;;  %s1557_s17 = smov %s1139_s18 }
 0x433   : > { %s1558_s18 = smov %s1143_s19  ;;  %s1559_s19 = smov %s1245_s26 }
 0x434   : > { %s1560_s20 = smov %s1234_s23  ;;  %23 = sbr.rel (!%p21_p10) target bundleno = 6 (0x6), region = 105 }
 0x439   :  { %920 = vsyncpa [#allocation3], 1 }
 0x43a   :  { %922 = vsyncpa [#allocation3 + $0x1], 1 }

</bundles_post_ra>
